<compile_context>
chip_gen: v7x
topology: tpu7x:2x2x1
jax: 0.10.0
libtpu: 0.0.40
codegen_flags: <defaults>
</compile_context>

<pallas_src>
import functools

import jax
import jax.numpy as jnp
from jax.experimental import pallas as pl
from jax.experimental.pallas import tpu as pltpu

EPS = 1e-6


def _round_up(x, m):
    return ((x + m - 1) // m) * m


def _chip_info():
    """Returns (usable per-core VMEM bytes, TensorCores per chip).

    Conservative fallbacks (64 MiB, 1 core) keep the kernel safe on every
    generation if introspection is unavailable."""
    vmem_bytes = 64 * 1024 * 1024          # v7x per-TC physical: safe floor
    num_cores = 1
    try:
        info = pltpu.get_tpu_info()
        vmem_bytes = int(getattr(info, "vmem_capacity_bytes", vmem_bytes))
        for name in ("num_cores_per_chip", "tensorcores_per_chip", "num_cores"):
            v = getattr(info, name, None)
            if v:
                num_cores = int(v)
                break
    except Exception:
        pass
    try:
        kind = jax.devices()[0].device_kind.lower()
        if "v7" in kind:
            num_cores = max(num_cores, 2)              # v7x: 2 TCs per chip
            vmem_bytes = min(vmem_bytes, 64 * 1024 * 1024)   # 64 MiB per TC
    except Exception:
        pass
    return vmem_bytes, num_cores


def _pick_tiling(seq, bs, c, itemsize, sublane, num_cores, in_budget_bytes):
    """Choose (part, ns, tile_s, padded_seq).

    part    : leading "parallel" grid axis; 2 only on chips with 2 TensorCores.
    tile_s  : seq rows per block, multiple of the dtype's sublane packing and
              sized so the 3 double-buffered inputs fit `in_budget_bytes`.
    padded_seq = part * ns * tile_s >= seq (inputs are zero-padded to this)."""
    bytes_per_seq_row = 5 * bs * c * itemsize * 2      # 5*bs rows, double-buffered
    max_tile = max(sublane,
                   (in_budget_bytes // max(1, bytes_per_seq_row))
                   // sublane * sublane)
    part = 2 if (num_cores >= 2 and seq > sublane) else 1
    per_part = _round_up(pl.cdiv(seq, part), sublane)
    tile = min(max_tile, per_part)
    ns = pl.cdiv(per_part, tile)
    return part, ns, tile, part * ns * tile


def _semiloss_kernel(lab_ref, tgt_ref, unl_ref, out_ref, *, bs,
                     assume_sigmoid_binary):
    """Per-tile partial sums for SemiLoss.

    lab_ref : (2*bs, TILE_S, C)  labeled_pred tile   (native dtype)
    tgt_ref : (bs,   TILE_S, C)  target tile
    unl_ref : (2*bs, TILE_S, C)  unlabeled_pred tile
    out_ref : (1, n_q*8, C) f32, resident across the "arbitrary" seq axis.
              Quantity q occupies rows [8*q, 8*q+8): an (8, C) lane/sublane
              aligned slab of partial sums (reduced to one row in the wrapper).
        q = 0            : CE
        q = 1            : MSE
        q = 2      .. +bs: per-batch sum(p * t)            (ip)
        q = 2+bs   .. +bs: per-batch sum(p)                (sp)
        q = 2+2bs  .. +bs: per-batch sum(t)                (st)
        q = 2+3bs  .. +bs: per-batch sum(|p| + |t|)        (only if not assume)
    """
    j = pl.program_id(1)

    @pl.when(j == 0)
    def _init():
        out_ref[...] = jnp.zeros_like(out_ref)

    c = out_ref.shape[-1]

    def fold8(x):
        # (TILE_S, C) f32 -> (8, C): sum groups of 8 sublanes.  The sublane-
        # split reshape is layout-free; the reduce is plain vreg adds (VPU).
        r = x.shape[0] // 8
        if r == 1:
            return x
        return jnp.sum(x.reshape(r, 8, c), axis=0)

    def acc(q, val):
        lo = q * 8                                    # static slice: aligned,
        out_ref[0, lo:lo + 8, :] = out_ref[0, lo:lo + 8, :] + val   # unmasked

    # bs is tiny and static -> Python unroll keeps every slice a clean 2-D tile.
    for b in range(bs):
        p_n = lab_ref[b]                              # (TILE_S, C) native dtype
        t_n = tgt_ref[b]
        pn_n = lab_ref[b + bs]                        # pred_noise
        u1_n = unl_ref[b]
        u2_n = unl_ref[b + bs]

        p = p_n.astype(jnp.float32)
        t = t_n.astype(jnp.float32)

        # --- Cross entropy -------------------------------------------------
        if assume_sigmoid_binary:
            # binary t: -(1-t)log(1-p+e) - t log(p+e) == -log(select(t,p,1-p)+e)
            temp = -jnp.log(jnp.where(t > 0.5, p, 1.0 - p) + EPS)
        else:
            temp = (-(1.0 - t) * jnp.log(1.0 - p + EPS)
                    - t * jnp.log(p + EPS))
        acc(0, fold8(temp))

        # --- Consistency MSE: diffs in native dtype (packed bf16 on v6e/v7x),
        #     squares + accumulation in f32. ---------------------------------
        d1 = (p_n - pn_n).astype(jnp.float32)
        d2 = (u1_n - u2_n).astype(jnp.float32)
        acc(1, fold8(d1 * d1 + d2 * d2))

        # --- Dice partial sums (inn / cn / cp derived at finalize) ----------
        acc(2 + b, fold8((p_n * t_n).astype(jnp.float32)))
        acc(2 + bs + b, fold8(p))
        acc(2 + 2 * bs + b, fold8(t))
        if not assume_sigmoid_binary:
            acc(2 + 3 * bs + b, fold8(jnp.abs(p) + jnp.abs(t)))


def semi_loss(labeled_pred, target, unlabeled_pred, *,
              assume_sigmoid_binary=True):
    """Pallas implementation of SemiLoss.forward(..., validate=False).

    assume_sigmoid_binary=True enables the single-log CE and the abs-free
    cardinality (cp = sp + st), valid when preds are sigmoid outputs in [0, 1]
    and targets are binary/non-negative (the module's intended inputs).  Set
    False to reproduce the literal two-log / abs formulation for arbitrary
    inputs."""
    two_bs, seq, c = labeled_pred.shape
    bs = two_bs // 2
    itemsize = jnp.dtype(labeled_pred.dtype).itemsize
    sublane = 8 * max(1, 4 // itemsize)        # f32: 8, bf16: 16, int8/fp8: 32

    vmem_bytes, num_cores = _chip_info()
    # Double-buffered-input budget: ~21 MiB/core on v7x, up to 42 MiB on v6e.
    in_budget = max(4 << 20, min(vmem_bytes // 3, 48 << 20))
    part, ns, tile_s, padded_seq = _pick_tiling(
        seq, bs, c, itemsize, sublane, num_cores, in_budget)
    n_pad = padded_seq - seq

    if n_pad:
        pad = ((0, 0), (0, n_pad), (0, 0))
        labeled_pred = jnp.pad(labeled_pred, pad)      # zero padding: only CE is
        target = jnp.pad(target, pad)                  # affected, corrected below
        unlabeled_pred = jnp.pad(unlabeled_pred, pad)

    n_q = 2 + (3 if assume_sigmoid_binary else 4) * bs
    in_block_bytes = 5 * bs * tile_s * c * itemsize
    out_block_bytes = n_q * 8 * c * 4
    vmem_limit = int(min(vmem_bytes,
                         2 * in_block_bytes + 2 * out_block_bytes + (16 << 20)))

    kernel = functools.partial(_semiloss_kernel, bs=bs,
                               assume_sigmoid_binary=assume_sigmoid_binary)

    # TODO(synk): if C % 128 != 0, fold C into the lane dim wrapper-side (or pad
    # to 128) to avoid masked stores; if a huge C forces tile_s < ~256 on v7x,
    # sweep pipeline_mode=pl.Buffered(3) on the input BlockSpecs.
    grid_spec = pltpu.PrefetchScalarGridSpec(
        num_scalar_prefetch=0,
        grid=(part, ns),
        in_specs=[
            pl.BlockSpec((2 * bs, tile_s, c), lambda p, j: (0, p * ns + j, 0)),
            pl.BlockSpec((bs, tile_s, c), lambda p, j: (0, p * ns + j, 0)),
            pl.BlockSpec((2 * bs, tile_s, c), lambda p, j: (0, p * ns + j, 0)),
        ],
        out_specs=pl.BlockSpec((1, n_q * 8, c), lambda p, j: (p, 0, 0)),
    )

    cost = pl.CostEstimate(
        flops=int(22 * bs * padded_seq * c),
        transcendentals=int((1 if assume_sigmoid_binary else 2)
                            * bs * padded_seq * c),
        bytes_accessed=int(5 * bs * padded_seq * c * itemsize
                           + part * n_q * 8 * c * 4),
    )

    partial = pl.pallas_call(
        kernel,
        out_shape=jax.ShapeDtypeStruct((part, n_q * 8, c), jnp.float32),
        grid_spec=grid_spec,
        compiler_params=pltpu.CompilerParams(
            dimension_semantics=("parallel", "arbitrary"),
            vmem_limit_bytes=vmem_limit),
        cost_estimate=cost,
    )(labeled_pred, target, unlabeled_pred)

    # Tiny finalize: one cross-partition + cross-sublane add, the dice division,
    # and the padded-row CE correction — negligible vs the streamed main pass.
    stats = jnp.sum(partial.reshape(part, n_q, 8, c), axis=(0, 2))   # (n_q, C)

    ce_sum = jnp.sum(stats[0])
    if n_pad:
        # each zero-padded (p=0, t=0) element contributed -log(1+EPS) to CE
        ce_sum = ce_sum + jnp.float32(c * bs * n_pad) * jnp.log1p(jnp.float32(EPS))
    ce = ce_sum / jnp.float32(bs * seq)
    mse = jnp.sum(stats[1]) / jnp.float32(2 * bs * seq)

    ip = stats[2:2 + bs]
    sp = stats[2 + bs:2 + 2 * bs]
    st = stats[2 + 2 * bs:2 + 3 * bs]
    if assume_sigmoid_binary:
        cp = sp + st                               # |p|+|t| == p+t for p,t >= 0
    else:
        cp = stats[2 + 3 * bs:2 + 4 * bs]
    inn = jnp.float32(seq) - sp - st + ip          # sum((1-p)(1-t))
    cn = jnp.float32(2 * seq) - cp                 # sum(2 - |p| - |t|)
    dice_pos = (ip + EPS) / (cp + EPS)
    dice_neg = (inn + EPS) / (cn + EPS)
    dice = jnp.sum(jnp.mean(1.0 - dice_pos - dice_neg, axis=0))

    return ce + dice + mse


def semi_loss_ref(labeled_pred, target, unlabeled_pred):
    """Pure-JAX reference mirroring the PyTorch code, for sanity checking."""
    labeled_pred = labeled_pred.astype(jnp.float32)
    target = target.astype(jnp.float32)
    unlabeled_pred = unlabeled_pred.astype(jnp.float32)

    bs = labeled_pred.shape[0] // 2
    pred = labeled_pred[:bs]
    temp1 = -(1.0 - target) * jnp.log(1.0 - pred + EPS)
    temp2 = -target * jnp.log(pred + EPS)
    ce = jnp.sum(jnp.mean(temp1 + temp2, axis=(0, 1)))

    ip = jnp.sum(pred * target, axis=1)
    cp = jnp.sum(jnp.abs(pred) + jnp.abs(target), axis=1)
    dp = (ip + EPS) / (cp + EPS)
    inn = jnp.sum((1.0 - pred) * (1.0 - target), axis=1)
    cn = jnp.sum(2.0 - jnp.abs(pred) - jnp.abs(target), axis=1)
    dn = (inn + EPS) / (cn + EPS)
    dice = jnp.sum(jnp.mean(1.0 - dp - dn, axis=0))

    pred_noise = labeled_pred[bs:]
    ul1, ul2 = unlabeled_pred[:bs], unlabeled_pred[bs:]
    i1 = jnp.concatenate([pred, ul1], axis=0)
    i2 = jnp.concatenate([pred_noise, ul2], axis=0)
    mse = jnp.sum(jnp.mean((i1 - i2) ** 2, axis=(0, 1)))
    return ce + dice + mse


if __name__ == "__main__":
    # Shapes consistent with the forward: (2*bs, S, C) sigmoid-like predictions,
    # (bs, S, C) binary targets. bs=2, S=16, C=128.
    bs, S, C = 2, 16, 128
    key = jax.random.PRNGKey(0)
    k1, k2, k3 = jax.random.split(key, 3)

    labeled_pred = jax.random.uniform(k1, (2 * bs, S, C), jnp.float32,
                                      minval=0.01, maxval=0.99)
    target = (jax.random.uniform(k2, (bs, S, C), jnp.float32) > 0.5).astype(jnp.float32)
    unlabeled_pred = jax.random.uniform(k3, (2 * bs, S, C), jnp.float32,
                                        minval=0.01, maxval=0.99)

    loss_fn = jax.jit(semi_loss)
    out = jax.block_until_ready(loss_fn(labeled_pred, target, unlabeled_pred))
    ref = jax.block_until_ready(semi_loss_ref(labeled_pred, target, unlabeled_pred))
    assert jnp.allclose(out, ref, rtol=1e-5, atol=1e-3), (out, ref)

    print("KERNEL_OK")
</pallas_src>

<mosaic_0001>
module attributes {stable_mosaic.version = 11 : i64} {
  func.func @_semiloss_kernel(%arg0: i32, %arg1: i32, %arg2: memref<4x16x128xf32, #tpu.memory_space<vmem>>, %arg3: memref<2x16x128xf32, #tpu.memory_space<vmem>>, %arg4: memref<4x16x128xf32, #tpu.memory_space<vmem>>, %arg5: memref<1x64x128xf32, #tpu.memory_space<vmem>>) attributes {dimension_semantics = [#tpu.dimension_semantics<parallel>, #tpu.dimension_semantics<arbitrary>], iteration_bounds = array<i64: 1, 1>, scalar_prefetch = 0 : i64, scratch_operands = 0 : i64, tpu.core_type = #tpu.core_type<tc>, window_params = [{transform_indices = @transform_0, window_bounds = array<i64: 4, 16, 128>}, {transform_indices = @transform_1, window_bounds = array<i64: 2, 16, 128>}, {transform_indices = @transform_2, window_bounds = array<i64: 4, 16, 128>}, {transform_indices = @transform_3, window_bounds = array<i64: 1, 64, 128>}]} {
    %c0_i32 = arith.constant 0 : i32
    %0 = arith.cmpi eq, %arg1, %c0_i32 : i32
    %1 = arith.extui %0 : i1 to i32
    %c0_i32_0 = arith.constant 0 : i32
    %2 = arith.cmpi ne, %1, %c0_i32_0 : i32
    scf.if %2 {
      %cst_97 = arith.constant 0.000000e+00 : f32
      %135 = vector.broadcast %cst_97 : f32 to vector<1x64x128xf32>
      %c0_98 = arith.constant 0 : index
      %c0_99 = arith.constant 0 : index
      %c0_100 = arith.constant 0 : index
      %136 = vector.load %arg5[%c0_98, %c0_99, %c0_100] : memref<1x64x128xf32, #tpu.memory_space<vmem>>, vector<1x64x128xf32>
      tpu.vector_store %arg5[%c0_98, %c0_99, %c0_100], %135 {strides = array<i32>} : memref<1x64x128xf32, #tpu.memory_space<vmem>>, vector<1x64x128xf32>,
    } else {
    }
    %c0 = arith.constant 0 : index
    %c0_1 = arith.constant 0 : index
    %c0_2 = arith.constant 0 : index
    %3 = vector.load %arg2[%c0, %c0_1, %c0_2] : memref<4x16x128xf32, #tpu.memory_space<vmem>>, vector<1x16x128xf32>
    %4 = vector.shape_cast %3 : vector<1x16x128xf32> to vector<16x128xf32>
    %c0_3 = arith.constant 0 : index
    %c0_4 = arith.constant 0 : index
    %c0_5 = arith.constant 0 : index
    %5 = vector.load %arg3[%c0_3, %c0_4, %c0_5] : memref<2x16x128xf32, #tpu.memory_space<vmem>>, vector<1x16x128xf32>
    %6 = vector.shape_cast %5 : vector<1x16x128xf32> to vector<16x128xf32>
    %c2 = arith.constant 2 : index
    %c0_6 = arith.constant 0 : index
    %c0_7 = arith.constant 0 : index
    %7 = vector.load %arg2[%c2, %c0_6, %c0_7] : memref<4x16x128xf32, #tpu.memory_space<vmem>>, vector<1x16x128xf32>
    %8 = vector.shape_cast %7 : vector<1x16x128xf32> to vector<16x128xf32>
    %c0_8 = arith.constant 0 : index
    %c0_9 = arith.constant 0 : index
    %c0_10 = arith.constant 0 : index
    %9 = vector.load %arg4[%c0_8, %c0_9, %c0_10] : memref<4x16x128xf32, #tpu.memory_space<vmem>>, vector<1x16x128xf32>
    %10 = vector.shape_cast %9 : vector<1x16x128xf32> to vector<16x128xf32>
    %c2_11 = arith.constant 2 : index
    %c0_12 = arith.constant 0 : index
    %c0_13 = arith.constant 0 : index
    %11 = vector.load %arg4[%c2_11, %c0_12, %c0_13] : memref<4x16x128xf32, #tpu.memory_space<vmem>>, vector<1x16x128xf32>
    %12 = vector.shape_cast %11 : vector<1x16x128xf32> to vector<16x128xf32>
    %cst = arith.constant 5.000000e-01 : f32
    %13 = vector.broadcast %cst : f32 to vector<16x128xf32>
    %14 = arith.cmpf ogt, %6, %13 : vector<16x128xf32>
    %cst_14 = arith.constant 1.000000e+00 : f32
    %15 = vector.broadcast %cst_14 : f32 to vector<16x128xf32>
    %16 = arith.subf %15, %4 : vector<16x128xf32>
    %17 = arith.select %14, %4, %16 : vector<16x128xi1>, vector<16x128xf32>
    %cst_15 = arith.constant 9.99999997E-7 : f32
    %18 = vector.broadcast %cst_15 : f32 to vector<16x128xf32>
    %19 = arith.addf %17, %18 : vector<16x128xf32>
    %20 = math.log %19 : vector<16x128xf32>
    %cst_16 = arith.constant 0.000000e+00 : f32
    %21 = vector.broadcast %cst_16 : f32 to vector<16x128xf32>
    %22 = arith.subf %21, %20 : vector<16x128xf32>
    %23 = vector.shape_cast %22 : vector<16x128xf32> to vector<2x8x128xf32>
    %cst_17 = arith.constant dense<0.000000e+00> : vector<8x128xf32>
    %24 = vector.multi_reduction <add>, %23, %cst_17 [0] : vector<2x8x128xf32> to vector<8x128xf32>
    %c0_18 = arith.constant 0 : index
    %c0_19 = arith.constant 0 : index
    %c0_20 = arith.constant 0 : index
    %25 = vector.load %arg5[%c0_18, %c0_19, %c0_20] : memref<1x64x128xf32, #tpu.memory_space<vmem>>, vector<1x8x128xf32>
    %26 = vector.shape_cast %25 : vector<1x8x128xf32> to vector<8x128xf32>
    %27 = arith.addf %26, %24 : vector<8x128xf32>
    %c0_21 = arith.constant 0 : index
    %c0_22 = arith.constant 0 : index
    %c0_23 = arith.constant 0 : index
    %28 = vector.load %arg5[%c0_21, %c0_22, %c0_23] : memref<1x64x128xf32, #tpu.memory_space<vmem>>, vector<1x8x128xf32>
    %29 = vector.shape_cast %28 : vector<1x8x128xf32> to vector<8x128xf32>
    %30 = vector.shape_cast %27 : vector<8x128xf32> to vector<1x8x128xf32>
    tpu.vector_store %arg5[%c0_21, %c0_22, %c0_23], %30 {strides = array<i32>} : memref<1x64x128xf32, #tpu.memory_space<vmem>>, vector<1x8x128xf32>,
    %31 = arith.subf %4, %8 : vector<16x128xf32>
    %32 = arith.subf %10, %12 : vector<16x128xf32>
    %33 = arith.mulf %31, %31 : vector<16x128xf32>
    %34 = arith.mulf %32, %32 : vector<16x128xf32>
    %35 = arith.addf %33, %34 : vector<16x128xf32>
    %36 = vector.shape_cast %35 : vector<16x128xf32> to vector<2x8x128xf32>
    %cst_24 = arith.constant dense<0.000000e+00> : vector<8x128xf32>
    %37 = vector.multi_reduction <add>, %36, %cst_24 [0] : vector<2x8x128xf32> to vector<8x128xf32>
    %c0_25 = arith.constant 0 : index
    %c8 = arith.constant 8 : index
    %c0_26 = arith.constant 0 : index
    %38 = vector.load %arg5[%c0_25, %c8, %c0_26] : memref<1x64x128xf32, #tpu.memory_space<vmem>>, vector<1x8x128xf32>
    %39 = vector.shape_cast %38 : vector<1x8x128xf32> to vector<8x128xf32>
    %40 = arith.addf %39, %37 : vector<8x128xf32>
    %c0_27 = arith.constant 0 : index
    %c8_28 = arith.constant 8 : index
    %c0_29 = arith.constant 0 : index
    %41 = vector.load %arg5[%c0_27, %c8_28, %c0_29] : memref<1x64x128xf32, #tpu.memory_space<vmem>>, vector<1x8x128xf32>
    %42 = vector.shape_cast %41 : vector<1x8x128xf32> to vector<8x128xf32>
    %43 = vector.shape_cast %40 : vector<8x128xf32> to vector<1x8x128xf32>
    tpu.vector_store %arg5[%c0_27, %c8_28, %c0_29], %43 {strides = array<i32>} : memref<1x64x128xf32, #tpu.memory_space<vmem>>, vector<1x8x128xf32>,
    %44 = arith.mulf %4, %6 : vector<16x128xf32>
    %45 = vector.shape_cast %44 : vector<16x128xf32> to vector<2x8x128xf32>
    %cst_30 = arith.constant dense<0.000000e+00> : vector<8x128xf32>
    %46 = vector.multi_reduction <add>, %45, %cst_30 [0] : vector<2x8x128xf32> to vector<8x128xf32>
    %c0_31 = arith.constant 0 : index
    %c16 = arith.constant 16 : index
    %c0_32 = arith.constant 0 : index
    %47 = vector.load %arg5[%c0_31, %c16, %c0_32] : memref<1x64x128xf32, #tpu.memory_space<vmem>>, vector<1x8x128xf32>
    %48 = vector.shape_cast %47 : vector<1x8x128xf32> to vector<8x128xf32>
    %49 = arith.addf %48, %46 : vector<8x128xf32>
    %c0_33 = arith.constant 0 : index
    %c16_34 = arith.constant 16 : index
    %c0_35 = arith.constant 0 : index
    %50 = vector.load %arg5[%c0_33, %c16_34, %c0_35] : memref<1x64x128xf32, #tpu.memory_space<vmem>>, vector<1x8x128xf32>
    %51 = vector.shape_cast %50 : vector<1x8x128xf32> to vector<8x128xf32>
    %52 = vector.shape_cast %49 : vector<8x128xf32> to vector<1x8x128xf32>
    tpu.vector_store %arg5[%c0_33, %c16_34, %c0_35], %52 {strides = array<i32>} : memref<1x64x128xf32, #tpu.memory_space<vmem>>, vector<1x8x128xf32>,
    %53 = vector.shape_cast %4 : vector<16x128xf32> to vector<2x8x128xf32>
    %cst_36 = arith.constant dense<0.000000e+00> : vector<8x128xf32>
    %54 = vector.multi_reduction <add>, %53, %cst_36 [0] : vector<2x8x128xf32> to vector<8x128xf32>
    %c0_37 = arith.constant 0 : index
    %c32 = arith.constant 32 : index
    %c0_38 = arith.constant 0 : index
    %55 = vector.load %arg5[%c0_37, %c32, %c0_38] : memref<1x64x128xf32, #tpu.memory_space<vmem>>, vector<1x8x128xf32>
    %56 = vector.shape_cast %55 : vector<1x8x128xf32> to vector<8x128xf32>
    %57 = arith.addf %56, %54 : vector<8x128xf32>
    %c0_39 = arith.constant 0 : index
    %c32_40 = arith.constant 32 : index
    %c0_41 = arith.constant 0 : index
    %58 = vector.load %arg5[%c0_39, %c32_40, %c0_41] : memref<1x64x128xf32, #tpu.memory_space<vmem>>, vector<1x8x128xf32>
    %59 = vector.shape_cast %58 : vector<1x8x128xf32> to vector<8x128xf32>
    %60 = vector.shape_cast %57 : vector<8x128xf32> to vector<1x8x128xf32>
    tpu.vector_store %arg5[%c0_39, %c32_40, %c0_41], %60 {strides = array<i32>} : memref<1x64x128xf32, #tpu.memory_space<vmem>>, vector<1x8x128xf32>,
    %61 = vector.shape_cast %6 : vector<16x128xf32> to vector<2x8x128xf32>
    %cst_42 = arith.constant dense<0.000000e+00> : vector<8x128xf32>
    %62 = vector.multi_reduction <add>, %61, %cst_42 [0] : vector<2x8x128xf32> to vector<8x128xf32>
    %c0_43 = arith.constant 0 : index
    %c48 = arith.constant 48 : index
    %c0_44 = arith.constant 0 : index
    %63 = vector.load %arg5[%c0_43, %c48, %c0_44] : memref<1x64x128xf32, #tpu.memory_space<vmem>>, vector<1x8x128xf32>
    %64 = vector.shape_cast %63 : vector<1x8x128xf32> to vector<8x128xf32>
    %65 = arith.addf %64, %62 : vector<8x128xf32>
    %c0_45 = arith.constant 0 : index
    %c48_46 = arith.constant 48 : index
    %c0_47 = arith.constant 0 : index
    %66 = vector.load %arg5[%c0_45, %c48_46, %c0_47] : memref<1x64x128xf32, #tpu.memory_space<vmem>>, vector<1x8x128xf32>
    %67 = vector.shape_cast %66 : vector<1x8x128xf32> to vector<8x128xf32>
    %68 = vector.shape_cast %65 : vector<8x128xf32> to vector<1x8x128xf32>
    tpu.vector_store %arg5[%c0_45, %c48_46, %c0_47], %68 {strides = array<i32>} : memref<1x64x128xf32, #tpu.memory_space<vmem>>, vector<1x8x128xf32>,
    %c1 = arith.constant 1 : index
    %c0_48 = arith.constant 0 : index
    %c0_49 = arith.constant 0 : index
    %69 = vector.load %arg2[%c1, %c0_48, %c0_49] : memref<4x16x128xf32, #tpu.memory_space<vmem>>, vector<1x16x128xf32>
    %70 = vector.shape_cast %69 : vector<1x16x128xf32> to vector<16x128xf32>
    %c1_50 = arith.constant 1 : index
    %c0_51 = arith.constant 0 : index
    %c0_52 = arith.constant 0 : index
    %71 = vector.load %arg3[%c1_50, %c0_51, %c0_52] : memref<2x16x128xf32, #tpu.memory_space<vmem>>, vector<1x16x128xf32>
    %72 = vector.shape_cast %71 : vector<1x16x128xf32> to vector<16x128xf32>
    %c3 = arith.constant 3 : index
    %c0_53 = arith.constant 0 : index
    %c0_54 = arith.constant 0 : index
    %73 = vector.load %arg2[%c3, %c0_53, %c0_54] : memref<4x16x128xf32, #tpu.memory_space<vmem>>, vector<1x16x128xf32>
    %74 = vector.shape_cast %73 : vector<1x16x128xf32> to vector<16x128xf32>
    %c1_55 = arith.constant 1 : index
    %c0_56 = arith.constant 0 : index
    %c0_57 = arith.constant 0 : index
    %75 = vector.load %arg4[%c1_55, %c0_56, %c0_57] : memref<4x16x128xf32, #tpu.memory_space<vmem>>, vector<1x16x128xf32>
    %76 = vector.shape_cast %75 : vector<1x16x128xf32> to vector<16x128xf32>
    %c3_58 = arith.constant 3 : index
    %c0_59 = arith.constant 0 : index
    %c0_60 = arith.constant 0 : index
    %77 = vector.load %arg4[%c3_58, %c0_59, %c0_60] : memref<4x16x128xf32, #tpu.memory_space<vmem>>, vector<1x16x128xf32>
    %78 = vector.shape_cast %77 : vector<1x16x128xf32> to vector<16x128xf32>
    %cst_61 = arith.constant 5.000000e-01 : f32
    %79 = vector.broadcast %cst_61 : f32 to vector<16x128xf32>
    %80 = arith.cmpf ogt, %72, %79 : vector<16x128xf32>
    %cst_62 = arith.constant 1.000000e+00 : f32
    %81 = vector.broadcast %cst_62 : f32 to vector<16x128xf32>
    %82 = arith.subf %81, %70 : vector<16x128xf32>
    %83 = arith.select %80, %70, %82 : vector<16x128xi1>, vector<16x128xf32>
    %cst_63 = arith.constant 9.99999997E-7 : f32
    %84 = vector.broadcast %cst_63 : f32 to vector<16x128xf32>
    %85 = arith.addf %83, %84 : vector<16x128xf32>
    %86 = math.log %85 : vector<16x128xf32>
    %cst_64 = arith.constant 0.000000e+00 : f32
    %87 = vector.broadcast %cst_64 : f32 to vector<16x128xf32>
    %88 = arith.subf %87, %86 : vector<16x128xf32>
    %89 = vector.shape_cast %88 : vector<16x128xf32> to vector<2x8x128xf32>
    %cst_65 = arith.constant dense<0.000000e+00> : vector<8x128xf32>
    %90 = vector.multi_reduction <add>, %89, %cst_65 [0] : vector<2x8x128xf32> to vector<8x128xf32>
    %c0_66 = arith.constant 0 : index
    %c0_67 = arith.constant 0 : index
    %c0_68 = arith.constant 0 : index
    %91 = vector.load %arg5[%c0_66, %c0_67, %c0_68] : memref<1x64x128xf32, #tpu.memory_space<vmem>>, vector<1x8x128xf32>
    %92 = vector.shape_cast %91 : vector<1x8x128xf32> to vector<8x128xf32>
    %93 = arith.addf %92, %90 : vector<8x128xf32>
    %c0_69 = arith.constant 0 : index
    %c0_70 = arith.constant 0 : index
    %c0_71 = arith.constant 0 : index
    %94 = vector.load %arg5[%c0_69, %c0_70, %c0_71] : memref<1x64x128xf32, #tpu.memory_space<vmem>>, vector<1x8x128xf32>
    %95 = vector.shape_cast %94 : vector<1x8x128xf32> to vector<8x128xf32>
    %96 = vector.shape_cast %93 : vector<8x128xf32> to vector<1x8x128xf32>
    tpu.vector_store %arg5[%c0_69, %c0_70, %c0_71], %96 {strides = array<i32>} : memref<1x64x128xf32, #tpu.memory_space<vmem>>, vector<1x8x128xf32>,
    %97 = arith.subf %70, %74 : vector<16x128xf32>
    %98 = arith.subf %76, %78 : vector<16x128xf32>
    %99 = arith.mulf %97, %97 : vector<16x128xf32>
    %100 = arith.mulf %98, %98 : vector<16x128xf32>
    %101 = arith.addf %99, %100 : vector<16x128xf32>
    %102 = vector.shape_cast %101 : vector<16x128xf32> to vector<2x8x128xf32>
    %cst_72 = arith.constant dense<0.000000e+00> : vector<8x128xf32>
    %103 = vector.multi_reduction <add>, %102, %cst_72 [0] : vector<2x8x128xf32> to vector<8x128xf32>
    %c0_73 = arith.constant 0 : index
    %c8_74 = arith.constant 8 : index
    %c0_75 = arith.constant 0 : index
    %104 = vector.load %arg5[%c0_73, %c8_74, %c0_75] : memref<1x64x128xf32, #tpu.memory_space<vmem>>, vector<1x8x128xf32>
    %105 = vector.shape_cast %104 : vector<1x8x128xf32> to vector<8x128xf32>
    %106 = arith.addf %105, %103 : vector<8x128xf32>
    %c0_76 = arith.constant 0 : index
    %c8_77 = arith.constant 8 : index
    %c0_78 = arith.constant 0 : index
    %107 = vector.load %arg5[%c0_76, %c8_77, %c0_78] : memref<1x64x128xf32, #tpu.memory_space<vmem>>, vector<1x8x128xf32>
    %108 = vector.shape_cast %107 : vector<1x8x128xf32> to vector<8x128xf32>
    %109 = vector.shape_cast %106 : vector<8x128xf32> to vector<1x8x128xf32>
    tpu.vector_store %arg5[%c0_76, %c8_77, %c0_78], %109 {strides = array<i32>} : memref<1x64x128xf32, #tpu.memory_space<vmem>>, vector<1x8x128xf32>,
    %110 = arith.mulf %70, %72 : vector<16x128xf32>
    %111 = vector.shape_cast %110 : vector<16x128xf32> to vector<2x8x128xf32>
    %cst_79 = arith.constant dense<0.000000e+00> : vector<8x128xf32>
    %112 = vector.multi_reduction <add>, %111, %cst_79 [0] : vector<2x8x128xf32> to vector<8x128xf32>
    %c0_80 = arith.constant 0 : index
    %c24 = arith.constant 24 : index
    %c0_81 = arith.constant 0 : index
    %113 = vector.load %arg5[%c0_80, %c24, %c0_81] : memref<1x64x128xf32, #tpu.memory_space<vmem>>, vector<1x8x128xf32>
    %114 = vector.shape_cast %113 : vector<1x8x128xf32> to vector<8x128xf32>
    %115 = arith.addf %114, %112 : vector<8x128xf32>
    %c0_82 = arith.constant 0 : index
    %c24_83 = arith.constant 24 : index
    %c0_84 = arith.constant 0 : index
    %116 = vector.load %arg5[%c0_82, %c24_83, %c0_84] : memref<1x64x128xf32, #tpu.memory_space<vmem>>, vector<1x8x128xf32>
    %117 = vector.shape_cast %116 : vector<1x8x128xf32> to vector<8x128xf32>
    %118 = vector.shape_cast %115 : vector<8x128xf32> to vector<1x8x128xf32>
    tpu.vector_store %arg5[%c0_82, %c24_83, %c0_84], %118 {strides = array<i32>} : memref<1x64x128xf32, #tpu.memory_space<vmem>>, vector<1x8x128xf32>,
    %119 = vector.shape_cast %70 : vector<16x128xf32> to vector<2x8x128xf32>
    %cst_85 = arith.constant dense<0.000000e+00> : vector<8x128xf32>
    %120 = vector.multi_reduction <add>, %119, %cst_85 [0] : vector<2x8x128xf32> to vector<8x128xf32>
    %c0_86 = arith.constant 0 : index
    %c40 = arith.constant 40 : index
    %c0_87 = arith.constant 0 : index
    %121 = vector.load %arg5[%c0_86, %c40, %c0_87] : memref<1x64x128xf32, #tpu.memory_space<vmem>>, vector<1x8x128xf32>
    %122 = vector.shape_cast %121 : vector<1x8x128xf32> to vector<8x128xf32>
    %123 = arith.addf %122, %120 : vector<8x128xf32>
    %c0_88 = arith.constant 0 : index
    %c40_89 = arith.constant 40 : index
    %c0_90 = arith.constant 0 : index
    %124 = vector.load %arg5[%c0_88, %c40_89, %c0_90] : memref<1x64x128xf32, #tpu.memory_space<vmem>>, vector<1x8x128xf32>
    %125 = vector.shape_cast %124 : vector<1x8x128xf32> to vector<8x128xf32>
    %126 = vector.shape_cast %123 : vector<8x128xf32> to vector<1x8x128xf32>
    tpu.vector_store %arg5[%c0_88, %c40_89, %c0_90], %126 {strides = array<i32>} : memref<1x64x128xf32, #tpu.memory_space<vmem>>, vector<1x8x128xf32>,
    %127 = vector.shape_cast %72 : vector<16x128xf32> to vector<2x8x128xf32>
    %cst_91 = arith.constant dense<0.000000e+00> : vector<8x128xf32>
    %128 = vector.multi_reduction <add>, %127, %cst_91 [0] : vector<2x8x128xf32> to vector<8x128xf32>
    %c0_92 = arith.constant 0 : index
    %c56 = arith.constant 56 : index
    %c0_93 = arith.constant 0 : index
    %129 = vector.load %arg5[%c0_92, %c56, %c0_93] : memref<1x64x128xf32, #tpu.memory_space<vmem>>, vector<1x8x128xf32>
    %130 = vector.shape_cast %129 : vector<1x8x128xf32> to vector<8x128xf32>
    %131 = arith.addf %130, %128 : vector<8x128xf32>
    %c0_94 = arith.constant 0 : index
    %c56_95 = arith.constant 56 : index
    %c0_96 = arith.constant 0 : index
    %132 = vector.load %arg5[%c0_94, %c56_95, %c0_96] : memref<1x64x128xf32, #tpu.memory_space<vmem>>, vector<1x8x128xf32>
    %133 = vector.shape_cast %132 : vector<1x8x128xf32> to vector<8x128xf32>
    %134 = vector.shape_cast %131 : vector<8x128xf32> to vector<1x8x128xf32>
    tpu.vector_store %arg5[%c0_94, %c56_95, %c0_96], %134 {strides = array<i32>} : memref<1x64x128xf32, #tpu.memory_space<vmem>>, vector<1x8x128xf32>,
    return
  }
  func.func @transform_0(%arg0: i32, %arg1: i32) -> (i32, i32, i32) {
    %c1_i32 = arith.constant 1 : i32
    %0 = arith.muli %arg0, %c1_i32 : i32
    %1 = arith.addi %0, %arg1 : i32
    %c0_i32 = arith.constant 0 : i32
    %c0_i32_0 = arith.constant 0 : i32
    %c0_i32_1 = arith.constant 0 : i32
    return %c0_i32, %1, %c0_i32_0 : i32, i32, i32
  }
  func.func @transform_1(%arg0: i32, %arg1: i32) -> (i32, i32, i32) {
    %c1_i32 = arith.constant 1 : i32
    %0 = arith.muli %arg0, %c1_i32 : i32
    %1 = arith.addi %0, %arg1 : i32
    %c0_i32 = arith.constant 0 : i32
    %c0_i32_0 = arith.constant 0 : i32
    %c0_i32_1 = arith.constant 0 : i32
    return %c0_i32, %1, %c0_i32_0 : i32, i32, i32
  }
  func.func @transform_2(%arg0: i32, %arg1: i32) -> (i32, i32, i32) {
    %c1_i32 = arith.constant 1 : i32
    %0 = arith.muli %arg0, %c1_i32 : i32
    %1 = arith.addi %0, %arg1 : i32
    %c0_i32 = arith.constant 0 : i32
    %c0_i32_0 = arith.constant 0 : i32
    %c0_i32_1 = arith.constant 0 : i32
    return %c0_i32, %1, %c0_i32_0 : i32, i32, i32
  }
  func.func @transform_3(%arg0: i32, %arg1: i32) -> (i32, i32, i32) {
    %c0_i32 = arith.constant 0 : i32
    %c0_i32_0 = arith.constant 0 : i32
    %c0_i32_1 = arith.constant 0 : i32
    return %arg0, %c0_i32, %c0_i32_0 : i32, i32, i32
  }
}

</mosaic_0001>

<bundles_post_ra>
// kernel: semi_loss.1
= control target key start
LH: loop header
LB: loop body
LE: loop exit
PB: predicated region body
PF: predicated region fallthrough
CT: control target
= control target key end

     0   :  { %8 = vsyncpa [#allocation3], 0  ;;  %s396_s0 = inlined_call_operand.hbm [shape: f32[4,16,128], index: 0, kind: input, shape index: {}]   ;;  %s397_s1 = inlined_call_operand.hbm [shape: f32[2,16,128], index: 1, kind: input, shape index: {}]   ;;  %s398_s2 = inlined_call_operand.hbm [shape: f32[4,16,128], index: 2, kind: input, shape index: {}]   ;;  %s399_s3 = inlined_call_operand.vmem [shape: f32[1,64,128], index: 3, kind: output, shape index: {}]  }
   0x1   :  { %9 = vsyncpa [#allocation5], 0  ;;  %s294_s12 = smov [#allocation4]   ;;  %s295_s14 = smov [#allocation2]  }
   0x2   :  { %s35_s13 = sshll.u32 %s294_s12, 4  ;;  %s19_s15 = sshll.u32 %s295_s14, 4  ;;  %s36_s13 = int_to_ptr.vmem [resolvable:$true] %s35_s13  ;;  %s319_s15 = int_to_ptr.vmem [resolvable:$true] %s19_s15 }
   0x3   :  { %s224_s18 = scalar_lea.hbm %s397_s1, 512 }
   0x4   :  { %p225_p0 = scmp.ne.s32.totalorder %s397_s1, %s224_s18  ;;  %p228_p1 = scmp.lt.u32.totalorder %s224_s18, %s397_s1 }
   0x6   :  { %p230_p2 = pnand %p228_p1, %p225_p0 }
   0x8   :  { %233 = shalt.err (!%p230_p2)
}
   0x9   :  { %s234_s23 = scalar_lea.vmem %s36_s13, 512  ;;  %p239_p4 = scmp.lt.s32.totalorder %s36_s13, %s36_s13 }
   0xa   :  { %p235_p3 = scmp.ne.s32.totalorder %s36_s13, %s234_s23  ;;  %p240_p5 = scmp.lt.s32.totalorder %s234_s23, %s234_s23 }
   0xc   :  { %p241_p6 = por %p240_p5, %p239_p4 }
   0xe   :  { %p242_p7 = pnand %p241_p6, %p235_p3 }
  0x10   :  { %245 = shalt.err (!%p242_p7)
}
  0x11   :  { %s296_s24 = smov 128   ;;  %s297_s25 = smov 8  }
  0x12   :  { %41 = dma.hbm_to_vmem [thread:$0]  %s397_s1, 512, %s36_s13, [#allocation5], %s296_s24, %s296_s24, %s297_s25  }
  0x13   :  { %s246_s30 = scalar_lea.hbm %s396_s0, 1024 }
  0x14   :  { %p247_p8 = scmp.ne.s32.totalorder %s396_s0, %s246_s30  ;;  %p250_p9 = scmp.lt.u32.totalorder %s246_s30, %s396_s0 }
  0x16   :  { %p252_p10 = pnand %p250_p9, %p247_p8 }
  0x18   :  { %255 = shalt.err (!%p252_p10)
}
  0x19   :  { %s256_s8 = scalar_lea.vmem %s319_s15, 1024  ;;  %p261_p12 = scmp.lt.s32.totalorder %s319_s15, %s319_s15 }
  0x1a   :  { %p257_p11 = scmp.ne.s32.totalorder %s319_s15, %s256_s8  ;;  %p262_p13 = scmp.lt.s32.totalorder %s256_s8, %s256_s8 }
  0x1c   :  { %p263_p0 = por %p262_p13, %p261_p12 }
  0x1e   :  { %p264_p1 = pnand %p263_p0, %p257_p11 }
  0x20   :  { %267 = shalt.err (!%p264_p1)
}
  0x21   :  { %25 = dma.hbm_to_vmem [thread:$0]  %s396_s0, 1024, %s319_s15, [#allocation3], %s296_s24, %s296_s24, %s297_s25  }
  0x22   :  { %s298_s10 = smov [#allocation6]   ;;  %s268_s14 = scalar_lea.hbm %s398_s2, 1024 }
  0x23   :  { %s51_s11 = sshll.u32 %s298_s10, 4  ;;  %p269_p2 = scmp.ne.s32.totalorder %s398_s2, %s268_s14  ;;  %s52_s11 = int_to_ptr.vmem [resolvable:$true] %s51_s11 }
  0x24   :  { %p272_p3 = scmp.lt.u32.totalorder %s268_s14, %s398_s2 }
  0x26   :  { %p274_p4 = pnand %p272_p3, %p269_p2 }
  0x28   :  { %277 = shalt.err (!%p274_p4)
}
  0x29   :  { %s278_s20 = scalar_lea.vmem %s52_s11, 1024  ;;  %p283_p6 = scmp.lt.s32.totalorder %s52_s11, %s52_s11 }
  0x2a   :  { %p279_p5 = scmp.ne.s32.totalorder %s52_s11, %s278_s20  ;;  %p284_p7 = scmp.lt.s32.totalorder %s278_s20, %s278_s20 }
  0x2c   :  { %p285_p8 = por %p284_p7, %p283_p6 }
  0x2e   :  { %p286_p9 = pnand %p285_p8, %p279_p5 }
  0x30   :  { %289 = shalt.err (!%p286_p9)
}
  0x31   :  { %57 = dma.hbm_to_vmem [thread:$0]  %s398_s2, 1024, %s52_s11, [#allocation5], %s296_s24, %s296_s24, %s297_s25  }
  0x32   :  { %290 = dma.done.wait [#allocation3], 1024  }
  0x33   :  { %291 = vsyncadd [#allocation3], 4294966272 }
  0x34   :  { %292 = dma.done.wait [#allocation5], 1536  }
  0x35   :  { %293 = vsyncadd [#allocation5], 4294965760  ;;  %v85_v0 = vld [vmem:[#allocation2] sm:$0xff]  ;;  %v86_v1 = vld [vmem:[#allocation2 + $0x8] sm:$0xff] }
  0x36   :  { %v87_v2 = vld [vmem:[#allocation4] sm:$0xff]  ;;  %v88_v3 = vld [vmem:[#allocation4 + $0x8] sm:$0xff]  ;;  %v99_v4 = vsub.f32 1.0, %v85_v0  ;;  %v100_v5 = vsub.f32 1.0, %v86_v1  ;;  %v135_v19 = vadd.f32 %v86_v1, %v85_v0  ;;  %v144_v20 = vld [vmem:[#allocation2 + $0x10] sm:$0xff] }
  0x37   :  { %vm97_vm0 = vcmp.gt.f32.partialorder %v87_v2, 0.5  ;;  %v90_v6 = vld [vmem:[#allocation2 + $0x20] sm:$0xff]  ;;  %v91_v7 = vld [vmem:[#allocation2 + $0x28] sm:$0xff]  ;;  %v129_v8 = vmul.f32 %v87_v2, %v85_v0  ;;  %vm98_vm1 = vcmp.gt.f32.partialorder %v88_v3, 0.5  ;;  %v130_v14 = vmul.f32 %v88_v3, %v86_v1  ;;  %v145_v21 = vld [vmem:[#allocation2 + $0x18] sm:$0xff] }
  0x38   :  { %v92_v9 = vld [vmem:[#allocation6] sm:$0xff]  ;;  %v93_v10 = vld [vmem:[#allocation6 + $0x8] sm:$0xff]  ;;  %v115_v12 = vsub.f32 %v85_v0, %v90_v6  ;;  %v116_v13 = vsub.f32 %v86_v1, %v91_v7  ;;  %v101_v15 = vsel %vm97_vm0, %v85_v0, %v99_v4  ;;  %v102_v16 = vsel %vm98_vm1, %v86_v1, %v100_v5  ;;  %v147_v26 = vld [vmem:[#allocation4 + $0x10] sm:$0xff]  ;;  %138 = vst [vmem:[%s399_s3 + $0x20] sm:$0xff] %v135_v19 }
  0x39   :  { %v95_v11 = vld [vmem:[#allocation6 + $0x20] sm:$0xff]  ;;  %v96_v17 = vld [vmem:[#allocation6 + $0x28] sm:$0xff]  ;;  %v103_v22 = vadd.f32 1e-06, %v101_v15  ;;  %v104_v23 = vadd.f32 1e-06, %v102_v16  ;;  %v131_v30 = vadd.f32 %v130_v14, %v129_v8  ;;  %v139_v35 = vadd.f32 %v88_v3, %v87_v2 }
  0x3a   :  { %v117_v18 = vsub.f32 %v92_v9, %v95_v11  ;;  %v118_v24 = vsub.f32 %v93_v10, %v96_v17  ;;  %v119_v25 = vmul.f32 %v115_v12, %v115_v12  ;;  %v148_v27 = vld [vmem:[#allocation4 + $0x18] sm:$0xff]  ;;  %v120_v28 = vmul.f32 %v116_v13, %v116_v13  ;;  %v150_v31 = vld [vmem:[#allocation2 + $0x30] sm:$0xff] }
  0x3b   :  { %v151_v32 = vld [vmem:[#allocation2 + $0x38] sm:$0xff]  ;;  %v153_v33 = vld [vmem:[#allocation6 + $0x10] sm:$0xff]  ;;  %216 = vlog2.f32 %v103_v22  ;;  %vm158_vm2 = vcmp.gt.f32.partialorder %v147_v26, 0.5  ;;  %vm159_vm3 = vcmp.gt.f32.partialorder %v148_v27, 0.5  ;;  %v160_v41 = vsub.f32 1.0, %v144_v20  ;;  %134 = vst [vmem:[%s399_s3 + $0x10] sm:$0xff] %v131_v30 }
  0x3c   :  { %v121_v29 = vmul.f32 %v117_v18, %v117_v18  ;;  %v122_v34 = vmul.f32 %v118_v24, %v118_v24  ;;  %v154_v36 = vld [vmem:[#allocation6 + $0x18] sm:$0xff]  ;;  %v156_v37 = vld [vmem:[#allocation6 + $0x30] sm:$0xff]  ;;  %218 = vlog2.f32 %v104_v23  ;;  %v161_v42 = vsub.f32 1.0, %v145_v21  ;;  %142 = vst [vmem:[%s399_s3 + $0x30] sm:$0xff] %v139_v35 }
  0x3d   :  { %v157_v38 = vld [vmem:[#allocation6 + $0x38] sm:$0xff]  ;;  %v176_v43 = vsub.f32 %v144_v20, %v150_v31  ;;  %v177_v44 = vsub.f32 %v145_v21, %v151_v32  ;;  %v178_v45 = vsub.f32 %v153_v33, %v156_v37  ;;  %v162_v48 = vsel %vm158_vm2, %v144_v20, %v160_v41 }
  0x3e   :  { %v123_v39 = vadd.f32 %v121_v29, %v119_v25  ;;  %v124_v40 = vadd.f32 %v122_v34, %v120_v28  ;;  %v179_v46 = vsub.f32 %v154_v36, %v157_v38  ;;  %v163_v49 = vsel %vm159_vm3, %v145_v21, %v161_v42 }
  0x3f   :  { %v190_v50 = vmul.f32 %v147_v26, %v144_v20  ;;  %v164_v51 = vadd.f32 1e-06, %v162_v48  ;;  %v165_v52 = vadd.f32 1e-06, %v163_v49  ;;  %v180_v53 = vmul.f32 %v176_v43, %v176_v43 }
  0x40   :  { %v125_v47 = vadd.f32 %v124_v40, %v123_v39  ;;  %v181_v54 = vmul.f32 %v177_v44, %v177_v44  ;;  %v182_v55 = vmul.f32 %v178_v45, %v178_v45  ;;  %v183_v56 = vmul.f32 %v179_v46, %v179_v46 }
  0x41   :  { %v191_v57 = vmul.f32 %v148_v27, %v145_v21  ;;  %220 = vlog2.f32 %v164_v51  ;;  %v196_v58 = vadd.f32 %v145_v21, %v144_v20  ;;  %v200_v59 = vadd.f32 %v148_v27, %v147_v26 }
  0x42   :  { %222 = vlog2.f32 %v165_v52  ;;  %v184_v60 = vadd.f32 %v182_v55, %v180_v53  ;;  %v185_v61 = vadd.f32 %v183_v56, %v181_v54 }
  0x43   :  { %v192_v62 = vadd.f32 %v191_v57, %v190_v50  ;;  %199 = vst [vmem:[%s399_s3 + $0x28] sm:$0xff] %v196_v58  ;;  %203 = vst [vmem:[%s399_s3 + $0x38] sm:$0xff] %v200_v59 }
  0x44   :  { %v186_v0 = vadd.f32 %v185_v61, %v184_v60 }
  0x45   :  { %v217_v63 = vpop.eup %216  ;;  %195 = vst [vmem:[%s399_s3 + $0x18] sm:$0xff] %v192_v62 }
  0x46   :  { %v219_v1 = vpop.eup %218  ;;  %v106_v2 = vmul.f32 0.6931472, %v217_v63  ;;  %v188_v4 = vadd.f32 %v186_v0, %v125_v47 }
  0x47   :  { %v108_v3 = vmul.f32 0.6931472, %v219_v1 }
  0x48   :  { %v109_v5 = vsub.f32 0.0, %v106_v2  ;;  %189 = vst [vmem:[%s399_s3 + $0x8] sm:$0xff] %v188_v4 }
  0x49   :  { %v110_v6 = vsub.f32 0.0, %v108_v3 }
  0x4b   :  { %v221_v7 = vpop.eup %220  ;;  %v111_v8 = vadd.f32 %v110_v6, %v109_v5 }
  0x4c   :  { %v223_v9 = vpop.eup %222  ;;  %v167_v10 = vmul.f32 0.6931472, %v221_v7 }
  0x4d   :  { %v169_v11 = vmul.f32 0.6931472, %v223_v9 }
  0x4e   :  { %v170_v12 = vsub.f32 0.0, %v167_v10 }
  0x4f   :  { %v171_v13 = vsub.f32 0.0, %v169_v11 }
  0x51   :  { %v172_v14 = vadd.f32 %v171_v13, %v170_v12 }
  0x53   :  { %v174_v15 = vadd.f32 %v172_v14, %v111_v8 }
  0x55   :  { %175 = vst [vmem:[%s399_s3] sm:$0xff] %v174_v15 }
  0x56   :  { %208 = vsyncpa [#allocation3], 1 }
  0x57   :  { %209 = vsyncpa [#allocation5], 1 }

</bundles_post_ra>
